<compile_context>
chip_gen: v6e
topology: v6e:2x2x1
jax: 0.10.0
libtpu: 0.0.40
codegen_flags: <defaults>
</compile_context>

<pallas_src>
import functools

import jax
import jax.numpy as jnp
from jax.experimental import pallas as pl
from jax.experimental.pallas import tpu as pltpu

GAMMA = 1.0


def _round_up(x, m):
    return ((x + m - 1) // m) * m


def _node_tile(n):
    """Node-axis tile: large 128-multiples for real graphs, one small
    16-aligned block for tiny graphs (block == full padded dim is legal)."""
    if n <= 128:
        return _round_up(n, 16)
    for t in (1024, 512, 256, 128):
        if n % t == 0:
            return t
    return 512 if n >= 2048 else 128


def _transform_kernel(fpad, gamma, x_ref, w_ref, n1_ref, n2_ref, h_ref):
    # Fused feature transform: X @ [W_mean | 0 | W_var | 0] in one MXU pass.
    xw = jnp.maximum(
        jnp.dot(x_ref[...], w_ref[...], preferred_element_type=jnp.float32),
        0.0)
    mean = xw[:, :fpad]          # 128-aligned lane slices
    var = xw[:, fpad:]
    att = jnp.exp(-gamma * var)  # EUP; f32 elementwise (v5e has no bf16 VPU/EUP)
    n1 = n1_ref[...]
    n2 = n2_ref[...]
    h_ref[:, :fpad] = (mean * att * n1).astype(h_ref.dtype)
    h_ref[:, fpad:] = (var * att * att * n2).astype(h_ref.dtype)


def _aggregate_kernel(fpad, adj_ref, h_ref, n1_ref, n2_ref, out_ref, acc_ref):
    k = pl.program_id(1)

    @pl.when(k == 0)
    def _():
        acc_ref[...] = jnp.zeros_like(acc_ref)

    # bf16 x bf16 -> f32 accumulate on the MXU.
    acc_ref[...] += jnp.dot(adj_ref[...], h_ref[...],
                            preferred_element_type=jnp.float32)

    @pl.when(k == pl.num_programs(1) - 1)
    def _():
        # Destination-side normalization: norm1 on the mean lanes, norm2 on
        # the var lanes (lane-index select -> no lane-unaligned concat).
        lane = jax.lax.broadcasted_iota(jnp.int32, acc_ref.shape, 1)
        scale = jnp.where(lane < fpad, n1_ref[...], n2_ref[...])
        out_ref[...] = acc_ref[...] * scale


def robust_conv(x, w_mean, w_var, adj, gamma=GAMMA):
    n, fin = x.shape
    fout = w_mean.shape[1]
    f32 = jnp.float32

    fpad = _round_up(fout, 128)   # lane-dense per-branch slab width
    fmsg = 2 * fpad
    t = _node_tile(n)
    npad = _round_up(n, t)

    # Degree normalization: one streaming row-sum (padded rows -> deg 0 ->
    # clamped to 1; padded cols are zero and contribute nothing).
    degs = jnp.maximum(jnp.sum(adj.astype(f32), axis=1, keepdims=True), 1.0)
    norm1 = degs ** -0.5
    norm2 = 1.0 / degs
    norm1 = jnp.pad(norm1, ((0, npad - n), (0, 0)), constant_values=1.0)
    norm2 = jnp.pad(norm2, ((0, npad - n), (0, 0)), constant_values=1.0)

    # Zero-padded, lane-aligned operands; adjacency cast to bf16 (exact 0/1).
    x_p = jnp.pad(x.astype(f32), ((0, npad - n), (0, 0)))
    w_cat = jnp.zeros((fin, fmsg), f32)
    w_cat = w_cat.at[:, :fout].set(w_mean.astype(f32))
    w_cat = w_cat.at[:, fpad:fpad + fout].set(w_var.astype(f32))
    adj_p = jnp.pad(adj, ((0, npad - n), (0, npad - n))).astype(jnp.bfloat16)

    grid_m = npad // t
    cparams = lambda sem: pltpu.CompilerParams(
        dimension_semantics=sem, vmem_limit_bytes=32 * 1024 * 1024)

    # ---- Pass 1: H = [mean*att*norm1 | var*att^2*norm2]  (bf16, lane-dense).
    h = pl.pallas_call(
        functools.partial(_transform_kernel, fpad, gamma),
        out_shape=jax.ShapeDtypeStruct((npad, fmsg), jnp.bfloat16),
        grid=(grid_m,),
        in_specs=[
            pl.BlockSpec((t, fin), lambda i: (i, 0)),
            pl.BlockSpec((fin, fmsg), lambda i: (0, 0)),
            pl.BlockSpec((t, 1), lambda i: (i, 0)),
            pl.BlockSpec((t, 1), lambda i: (i, 0)),
        ],
        out_specs=pl.BlockSpec((t, fmsg), lambda i: (i, 0)),
        compiler_params=cparams(("parallel",)),
    )(x_p, w_cat, norm1, norm2)

    # ---- Pass 2: tiled aggregation (A @ H) with destination-side norm scale.
    # TODO(synk): for realistically sparse graphs, prefetch a per-tile nonzero
    # count via PrefetchScalarGridSpec and skip empty adjacency tiles.
    out = pl.pallas_call(
        functools.partial(_aggregate_kernel, fpad),
        out_shape=jax.ShapeDtypeStruct((npad, fmsg), f32),
        grid=(grid_m, grid_m),
        in_specs=[
            pl.BlockSpec((t, t), lambda i, k: (i, k)),       # adj tile
            pl.BlockSpec((t, fmsg), lambda i, k: (k, 0)),    # H tile (source rows)
            pl.BlockSpec((t, 1), lambda i, k: (i, 0)),       # norm1 (dest rows)
            pl.BlockSpec((t, 1), lambda i, k: (i, 0)),       # norm2 (dest rows)
        ],
        out_specs=pl.BlockSpec((t, fmsg), lambda i, k: (i, 0)),
        scratch_shapes=[pltpu.VMEM((t, fmsg), f32)],
        compiler_params=cparams(("parallel", "arbitrary")),
    )(adj_p, h, norm1, norm2)

    mean_out = out[:n, :fout]
    var_out = out[:n, fpad:fpad + fout]
    return mean_out, var_out


def robust_conv_ref(x, w_mean, w_var, adj, gamma=GAMMA):
    mean = jnp.maximum(x @ w_mean, 0.0)
    var = jnp.maximum(x @ w_var, 0.0)
    att = jnp.exp(-gamma * var)
    degs = jnp.maximum(adj.sum(axis=1, keepdims=True), 1.0)
    norm1 = degs ** -0.5
    norm2 = 1.0 / degs
    mean_out = (adj @ (mean * att * norm1)) * norm1
    var_out = (adj @ (var * att * att * norm2)) * norm2
    return mean_out, var_out


def xavier_uniform(key, fan_in, fan_out):
    bound = (6.0 / (fan_in + fan_out)) ** 0.5
    return jax.random.uniform(key, (fan_in, fan_out), jnp.float32, -bound, bound)


if __name__ == "__main__":
    N, IN_FEATS, OUT_FEATS = 16, 8, 32

    key = jax.random.PRNGKey(0)
    k_x, k_wm, k_wv, k_adj = jax.random.split(key, 4)

    x = jax.random.normal(k_x, (N, IN_FEATS), jnp.float32)
    w_mean = xavier_uniform(k_wm, IN_FEATS, OUT_FEATS)
    w_var = xavier_uniform(k_wv, IN_FEATS, OUT_FEATS)
    # Random directed graph adjacency (A[i, j] = 1 iff edge j -> i).
    adj = (jax.random.uniform(k_adj, (N, N)) < 0.3).astype(jnp.float32)

    mean_out, var_out = robust_conv(x, w_mean, w_var, adj)
    jax.block_until_ready((mean_out, var_out))

    ref_mean, ref_var = robust_conv_ref(x, w_mean, w_var, adj)
    # bf16 adjacency is exact (0/1); bf16 message matrix H introduces ~0.4%
    # relative error, hence the loosened tolerance vs. the f32 reference.
    assert jnp.allclose(mean_out, ref_mean, atol=2e-2, rtol=2e-2)
    assert jnp.allclose(var_out, ref_var, atol=2e-2, rtol=2e-2)

    print("KERNEL_OK")
</pallas_src>

<mosaic_0001>
module attributes {stable_mosaic.version = 11 : i64} {
  func.func @_transform_kernel(%arg0: i32, %arg1: memref<16x8xf32, #tpu.memory_space<vmem>>, %arg2: memref<8x256xf32, #tpu.memory_space<vmem>>, %arg3: memref<16x1xf32, #tpu.memory_space<vmem>>, %arg4: memref<16x1xf32, #tpu.memory_space<vmem>>, %arg5: memref<16x256xbf16, #tpu.memory_space<vmem>>) attributes {dimension_semantics = [#tpu.dimension_semantics<parallel>], iteration_bounds = array<i64: 1>, scalar_prefetch = 0 : i64, scratch_operands = 0 : i64, tpu.core_type = #tpu.core_type<tc>, window_params = [{transform_indices = @transform_0, window_bounds = array<i64: 16, 8>}, {pipeline_mode = #tpu.pipeline_mode<synchronous>, transform_indices = @transform_1, window_bounds = array<i64: 8, 256>}, {transform_indices = @transform_2, window_bounds = array<i64: 16, 1>}, {transform_indices = @transform_3, window_bounds = array<i64: 16, 1>}, {transform_indices = @transform_4, window_bounds = array<i64: 16, 256>}]} {
    %c0 = arith.constant 0 : index
    %c0_0 = arith.constant 0 : index
    %0 = vector.load %arg1[%c0, %c0_0] : memref<16x8xf32, #tpu.memory_space<vmem>>, vector<16x8xf32>
    %c0_1 = arith.constant 0 : index
    %c0_2 = arith.constant 0 : index
    %1 = vector.load %arg2[%c0_1, %c0_2] : memref<8x256xf32, #tpu.memory_space<vmem>>, vector<8x256xf32>
    %cst = arith.constant dense<0.000000e+00> : vector<16x256xf32>
    %2 = tpu.matmul %0, %1, %cst {dimension_numbers = #tpu.dot_dimension_numbers<[1], [0], [0], [1], [0, 0, 1, 1], [], []>} : vector<16x8xf32>, vector<8x256xf32>, vector<16x256xf32> -> vector<16x256xf32>
    %cst_3 = arith.constant 0.000000e+00 : f32
    %3 = vector.broadcast %cst_3 : f32 to vector<16x256xf32>
    %4 = arith.maximumf %2, %3 : vector<16x256xf32>
    %5 = vector.extract_strided_slice %4 {offsets = [0, 0], sizes = [16, 128], strides = [1, 1]} : vector<16x256xf32> to vector<16x128xf32>
    %6 = vector.extract_strided_slice %4 {offsets = [0, 128], sizes = [16, 128], strides = [1, 1]} : vector<16x256xf32> to vector<16x128xf32>
    %cst_4 = arith.constant -1.000000e+00 : f32
    %7 = vector.broadcast %cst_4 : f32 to vector<16x128xf32>
    %8 = arith.mulf %7, %6 : vector<16x128xf32>
    %9 = math.exp %8 : vector<16x128xf32>
    %c0_5 = arith.constant 0 : index
    %c0_6 = arith.constant 0 : index
    %10 = vector.load %arg3[%c0_5, %c0_6] : memref<16x1xf32, #tpu.memory_space<vmem>>, vector<16x1xf32>
    %c0_7 = arith.constant 0 : index
    %c0_8 = arith.constant 0 : index
    %11 = vector.load %arg4[%c0_7, %c0_8] : memref<16x1xf32, #tpu.memory_space<vmem>>, vector<16x1xf32>
    %12 = arith.mulf %5, %9 : vector<16x128xf32>
    %13 = vector.broadcast %10 : vector<16x1xf32> to vector<16x128xf32>
    %14 = arith.mulf %12, %13 : vector<16x128xf32>
    %15 = arith.truncf %14 : vector<16x128xf32> to vector<16x128xbf16>
    %c0_9 = arith.constant 0 : index
    %c0_10 = arith.constant 0 : index
    %16 = vector.load %arg5[%c0_9, %c0_10] : memref<16x256xbf16, #tpu.memory_space<vmem>>, vector<16x128xbf16>
    tpu.vector_store %arg5[%c0_9, %c0_10], %15 {strides = array<i32>} : memref<16x256xbf16, #tpu.memory_space<vmem>>, vector<16x128xbf16>,
    %17 = arith.mulf %6, %9 : vector<16x128xf32>
    %18 = arith.mulf %17, %9 : vector<16x128xf32>
    %19 = vector.broadcast %11 : vector<16x1xf32> to vector<16x128xf32>
    %20 = arith.mulf %18, %19 : vector<16x128xf32>
    %21 = arith.truncf %20 : vector<16x128xf32> to vector<16x128xbf16>
    %c0_11 = arith.constant 0 : index
    %c128 = arith.constant 128 : index
    %22 = vector.load %arg5[%c0_11, %c128] : memref<16x256xbf16, #tpu.memory_space<vmem>>, vector<16x128xbf16>
    tpu.vector_store %arg5[%c0_11, %c128], %21 {strides = array<i32>} : memref<16x256xbf16, #tpu.memory_space<vmem>>, vector<16x128xbf16>,
    return
  }
  func.func @transform_0(%arg0: i32) -> (i32, i32) {
    %c0_i32 = arith.constant 0 : i32
    %c0_i32_0 = arith.constant 0 : i32
    return %arg0, %c0_i32 : i32, i32
  }
  func.func @transform_1(%arg0: i32) -> (i32, i32) {
    %c0_i32 = arith.constant 0 : i32
    %c0_i32_0 = arith.constant 0 : i32
    %c0_i32_1 = arith.constant 0 : i32
    return %c0_i32, %c0_i32_0 : i32, i32
  }
  func.func @transform_2(%arg0: i32) -> (i32, i32) {
    %c0_i32 = arith.constant 0 : i32
    %c0_i32_0 = arith.constant 0 : i32
    return %arg0, %c0_i32 : i32, i32
  }
  func.func @transform_3(%arg0: i32) -> (i32, i32) {
    %c0_i32 = arith.constant 0 : i32
    %c0_i32_0 = arith.constant 0 : i32
    return %arg0, %c0_i32 : i32, i32
  }
  func.func @transform_4(%arg0: i32) -> (i32, i32) {
    %c0_i32 = arith.constant 0 : i32
    %c0_i32_0 = arith.constant 0 : i32
    return %arg0, %c0_i32 : i32, i32
  }
}

</mosaic_0001>

<bundles_post_ra>
// kernel: tpu_custom_call.1
= control target key start
LH: loop header
LB: loop body
LE: loop exit
PB: predicated region body
PF: predicated region fallthrough
CT: control target
= control target key end

     0   :  { %vm22_vm0 = vcmask 64512   ;;  %s288_s0 = inlined_call_operand.vmem [shape: f32[16,8], index: 0, kind: input, shape index: {}]   ;;  %s289_s1 = inlined_call_operand.vmem [shape: f32[8,256], index: 1, kind: input, shape index: {}]   ;;  %s290_s2 = inlined_call_operand.vmem [shape: f32[16,1], index: 2, kind: input, shape index: {}]   ;;  %s291_s3 = inlined_call_operand.vmem [shape: f32[16,1], index: 3, kind: input, shape index: {}]   ;;  %s292_s4 = inlined_call_operand.hbm [shape: bf16[16,256], index: 4, kind: output, shape index: {}]  }
   0x1   :  { %v21_v0 = vld [vmem:[%s289_s1 + $0x8] sm:$0xff]  ;;  %v20_v1 = vld [vmem:[%s289_s1] sm:$0xff] }
   0x2   :  { %59 = vmatprep.subr.mxu0 %v21_v0  ;;  %196 = vmatprep.subr.mxu1 %v21_v0  ;;  %v18_v2 = vld [vmem:[%s288_s0] sm:$0xff]  ;;  %v19_v3 = vld [vmem:[%s288_s0 + $0x8] sm:$0xff] }
   0x3   :  { %60 = vmatpush1.msra.mxu0 %v20_v1  ;;  %197 = vmatpush1.msra.mxu1 %v20_v1 }
   0x4   :  { %9 = vsyncpa [#allocation3], 0  ;;  %v231_v4 = vmov 0.0   ;;  %v118_v5 = vld [vmem:[%s291_s3] sm:$0xff]  ;;  %v232_v7 = vmov 0   ;;  %v119_v8 = vld [vmem:[%s291_s3 + $0x8] sm:$0xff] }
   0x5   :  { %93 = vmatprep.mubr.f32.mxu0 %v231_v4  ;;  %99 = vmatprep.mubr.f32.mxu1 %v231_v4  ;;  %v116_v6 = vld [vmem:[%s290_s2] sm:$0xff]  ;;  %v117_v9 = vld [vmem:[%s290_s2 + $0x8] sm:$0xff]  ;;  %s233_s2 = smov [#allocation2]  }
   0x6   :  { %186 = vmatmul.mubr.msk.f32.vlgmr.msra.gmra.mxu0 %vm22_vm0, %v18_v2  ;;  %187 = vmatmul.mubr.msk.f32.vlgmr.msra.gmra.mxu1 %vm22_vm0, %v19_v3  ;;  %s175_s3 = sshll.u32 %s233_s2, 4  ;;  %s176_s3 = int_to_ptr.vmem [resolvable:$true] %s175_s3 }
   0x7   :  { %204 = vset.pattern.permute.xlu1 %v232_v7  ;;  %203 = vset.pattern.permute.xlu0 %v232_v7  ;;  %s209_s29 = scalar_lea.vmem %s176_s3, 256  ;;  %p214_p1 = scmp.lt.s32.totalorder %s176_s3, %s176_s3 }
   0x8   :  { %150 = vperm.xlu1 %204, %v118_v5   ;;  %124 = vperm.xlu0 %203, %v116_v6   ;;  %p210_p0 = scmp.ne.s32.totalorder %s176_s3, %s209_s29  ;;  %p215_p2 = scmp.lt.s32.totalorder %s209_s29, %s209_s29 }
   0xa   :  { %p216_p3 = por %p215_p2, %p214_p1 }
   0xc   :  { %155 = vperm.xlu1 %204, %v119_v8   ;;  %129 = vperm.xlu0 %203, %v117_v9   ;;  %p217_p4 = pnand %p216_p3, %p210_p0 }
  0x83   :  { %v125_v20 = vpop.permute.xlu0 %124  ;;  %v151_v22 = vpop.permute.xlu1 %150 }
  0x87   :  { %v130_v32 = vpop.permute.xlu0 %129  ;;  %v156_v37 = vpop.permute.xlu1 %155 }
  0xc6   :  { %v95_v10 = vpop.f32.mrf.mxu0  ;;  %v101_v11 = vpop.f32.mrf.mxu1 }
  0xc7   :  { %v106_v21 = vmax.f32 %v95_v10, 0.0  ;;  %v108_v24 = vmax.f32 %v101_v11, 0.0 }
  0xc8   :  { %v97_v12 = vpop.f32.mrf.mxu0  ;;  %v103_v13 = vpop.f32.mrf.mxu1 }
  0xc9   :  { %v107_v14 = vmax.f32 %v97_v12, 0.0  ;;  %v109_v15 = vmax.f32 %v103_v13, 0.0 }
  0xcb   :  { %v110_v16 = vmul.f32 -1.0, %v107_v14  ;;  %v111_v17 = vmul.f32 -1.0, %v109_v15 }
  0xcd   :  { %v112_v18 = vmul.f32 1.442695, %v110_v16  ;;  %v114_v19 = vmul.f32 1.442695, %v111_v17 }
  0xcf   :  { %205 = vpow2.f32 %v112_v18 }
  0xd0   :  { %207 = vpow2.f32 %v114_v19 }
  0xdc   :  { %v206_v23 = vpop.eup %205 }
  0xdd   :  { %v208_v25 = vpop.eup %207  ;;  %v144_v26 = vmul.f32 %v206_v23, %v107_v14  ;;  %v120_v27 = vmul.f32 %v206_v23, %v106_v21 }
  0xde   :  { %v145_v28 = vmul.f32 %v208_v25, %v109_v15  ;;  %v121_v29 = vmul.f32 %v208_v25, %v108_v24 }
  0xdf   :  { %v146_v30 = vmul.f32 %v206_v23, %v144_v26  ;;  %v132_v31 = vmul.f32 %v125_v20, %v120_v27 }
  0xe0   :  { %v147_v33 = vmul.f32 %v208_v25, %v145_v28  ;;  %v133_v34 = vmul.f32 %v130_v32, %v121_v29 }
  0xe1   :  { %v158_v35 = vmul.f32 %v151_v22, %v146_v30  ;;  %v192_v36 = vpack.c.bf16 %v132_v31, %v132_v31 }
  0xe2   :  { %v159_v38 = vmul.f32 %v156_v37, %v147_v33  ;;  %v193_v39 = vpack.c.bf16 %v133_v34, %v133_v34 }
  0xe3   :  { %v194_v40 = vpack.c.bf16 %v158_v35, %v158_v35  ;;  %142 = vst [vmem:[#allocation2] sm:$0xf] %v192_v36 }
  0xe4   :  { %v195_v41 = vpack.c.bf16 %v159_v38, %v159_v38  ;;  %143 = vst [vmem:[#allocation2 + $0x8] sm:$0xf] %v193_v39 }
  0xe5   :  { %168 = vst [vmem:[#allocation2 + $0x4] sm:$0xf] %v194_v40 }
  0xe6   :  { %169 = vst [vmem:[#allocation2 + $0xc] sm:$0xf] %v195_v41 }
  0xe7   :  { %220 = shalt.err (!%p217_p4)
}
  0xe8   :  { %s234_s30 = smov 128   ;;  %s235_s5 = smov 8  }
  0xe9   :  { %181 = dma.vmem_to_hbm [thread:$0]  %s176_s3, 256, %s292_s4, [#allocation3], %s234_s30, %s234_s30, %s235_s5  }
  0xea   :  { %229 = dma.done.wait [#allocation3], 256  }
  0xeb   :  { %230 = vsyncadd [#allocation3], 4294967040 }
  0xec   :  { %185 = vsyncpa [#allocation3], 1 }

</bundles_post_ra>
